<compile_context>
chip_gen: v6e
topology: v6e:2x2x1
jax: 0.10.0
libtpu: 0.0.40
codegen_flags: <defaults>
</compile_context>

<pallas_src>
import functools

import jax
import jax.numpy as jnp
from jax.experimental import pallas as pl
from jax.experimental.pallas import tpu as pltpu

EPS = 1e-5
NEG_SLOPE = 0.2
KSIZE = 4


def _round_up(x, m):
    return (x + m - 1) // m * m


def _pick_hw_tile(hw, k, target=512):
    """Largest multiple-of-8 divisor of hw that is <= target (else full hw).

    target is additionally capped so one bf16 patch block (hw_tile x K) stays
    around <= 4 MiB (double-buffered by the pipeline)."""
    cap = max(64, (4 * 1024 * 1024) // max(2 * k, 1))
    target = max(8, min(target, (cap // 8) * 8))
    if hw <= target:
        return hw
    for t in range(target, 7, -1):
        if hw % t == 0 and t % 8 == 0:
            return t
    return hw  # fall back to one full-HW tile: keeps the block layout legal


def _block_kernel(patches_ref, w_ref, o_ref, sum_ref, ssq_ref, *,
                  hw_tile, hw_total, n_hw_tiles):
    # patches_ref: (1, hw_tile, K) bf16   w_ref: (K, Cpad) bf16
    # o_ref:       (1, HW, Cpad) f32 (resident across the HW-tile axis)
    # sum_ref/ssq_ref: (1, Cpad) f32 scratch (per-channel running stats)
    t = pl.program_id(1)

    @pl.when(t == 0)
    def _init():
        sum_ref[...] = jnp.zeros_like(sum_ref)
        ssq_ref[...] = jnp.zeros_like(ssq_ref)

    x = patches_ref[0]                                          # (hw_tile, K) bf16
    w = w_ref[...]                                              # (K, Cpad)   bf16

    # Conv as MXU matmul, f32 accumulation. (Bias intentionally omitted: a
    # per-channel constant is a no-op under InstanceNorm2d(affine=False).)
    y = jnp.dot(x, w, preferred_element_type=jnp.float32)       # (hw_tile, Cpad)

    # Single-pass instance-norm statistics.
    sum_ref[...] += jnp.sum(y, axis=0, keepdims=True)
    ssq_ref[...] += jnp.sum(y * y, axis=0, keepdims=True)

    # Stash the un-normalized conv output into the resident output block.
    if n_hw_tiles == 1:
        o_ref[0] = y.astype(o_ref.dtype)
    else:
        start = pl.multiple_of(t * hw_tile, 8)
        o_ref[0, pl.ds(start, hw_tile), :] = y.astype(o_ref.dtype)

    @pl.when(t == n_hw_tiles - 1)
    def _finalize():
        inv_hw = 1.0 / float(hw_total)
        mean = sum_ref[...] * inv_hw                            # (1, Cpad)
        var = jnp.maximum(ssq_ref[...] * inv_hw - mean * mean, 0.0)
        scale = jax.lax.rsqrt(var + EPS)                        # (1, Cpad)
        shift = -mean * scale                                   # (1, Cpad)

        if n_hw_tiles == 1:
            yn = o_ref[0] * scale + shift
            o_ref[0] = jnp.where(yn >= 0, yn, NEG_SLOPE * yn)
        else:
            # Normalize tile-by-tile: bounded working set, streams through vregs.
            @pl.loop(0, n_hw_tiles)
            def _(i):
                s = pl.multiple_of(i * hw_tile, 8)
                blk = o_ref[0, pl.ds(s, hw_tile), :]            # (hw_tile, Cpad)
                yn = blk * scale + shift
                o_ref[0, pl.ds(s, hw_tile), :] = jnp.where(
                    yn >= 0, yn, NEG_SLOPE * yn)


def _im2col_reflect(x, stride):
    """x: (N, C, H, W) -> patches (N, Ho*Wo, C*4*4), K ordered (c, kh, kw)."""
    N, C, H, W = x.shape
    xp = jnp.pad(x, ((0, 0), (0, 0), (1, 1), (1, 1)), mode="reflect")
    Hp, Wp = H + 2, W + 2
    Ho = (Hp - KSIZE) // stride + 1
    Wo = (Wp - KSIZE) // stride + 1

    cols = []
    for kh in range(KSIZE):
        for kw in range(KSIZE):
            sl = xp[:, :,
                    kh:kh + stride * (Ho - 1) + 1:stride,
                    kw:kw + stride * (Wo - 1) + 1:stride]       # (N, C, Ho, Wo)
            cols.append(sl)
    pat = jnp.stack(cols, axis=2)                               # (N, C, 16, Ho, Wo)
    pat = pat.reshape(N, C * KSIZE * KSIZE, Ho * Wo)            # K = (c, kh, kw)
    pat = jnp.transpose(pat, (0, 2, 1))                         # (N, HW, K)
    return pat, Ho, Wo


def block_forward(x, weight, bias, stride, *, hw_tile_target=512):
    """x: (N, inC, H, W); weight: (outC, inC, 4, 4); bias: (outC,) -> NCHW out."""
    del bias  # exactly cancelled by InstanceNorm2d(affine=False); see kernel note
    N, inC, H, W = x.shape
    outC = weight.shape[0]
    K = inC * KSIZE * KSIZE

    patches, Ho, Wo = _im2col_reflect(x.astype(jnp.float32), stride)
    HW = Ho * Wo

    # bf16 MXU inputs; accumulation / epilogue stay f32 inside the kernel.
    patches = patches.astype(jnp.bfloat16)                      # (N, HW, K)

    # Lane-dense output channels: pad outC up to a multiple of 128.
    Cpad = _round_up(outC, 128)
    w_mat = weight.reshape(outC, K).T.astype(jnp.bfloat16)      # (K, outC)
    if Cpad != outC:
        w_mat = jnp.pad(w_mat, ((0, 0), (0, Cpad - outC)))      # (K, Cpad)

    hw_tile = _pick_hw_tile(HW, K, hw_tile_target)
    n_hw_tiles = HW // hw_tile

    kernel = functools.partial(_block_kernel, hw_tile=hw_tile, hw_total=HW,
                               n_hw_tiles=n_hw_tiles)

    # Rough VMEM budget: double-buffered inputs/outputs + scratch, with margin.
    vmem_est = (2 * hw_tile * K * 2          # patches blocks (bf16)
                + 2 * K * Cpad * 2           # weight block  (bf16)
                + 2 * HW * Cpad * 4          # resident output block (f32)
                + 2 * 2 * Cpad * 4)          # stats scratch
    vmem_limit = int(min(56 * 1024 * 1024, max(2 * vmem_est, 8 * 1024 * 1024)))

    cost = pl.CostEstimate(
        flops=2 * N * HW * K * Cpad,
        transcendentals=N * Cpad,
        bytes_accessed=patches.size * 2 + w_mat.size * 2 + N * HW * Cpad * 4,
    )

    out = pl.pallas_call(
        kernel,
        out_shape=jax.ShapeDtypeStruct((N, HW, Cpad), jnp.float32),
        grid_spec=pltpu.PrefetchScalarGridSpec(
            num_scalar_prefetch=0,
            grid=(N, n_hw_tiles),
            in_specs=[
                pl.BlockSpec((1, hw_tile, K), lambda n, t: (n, t, 0)),
                pl.BlockSpec((K, Cpad), lambda n, t: (0, 0)),
            ],
            out_specs=pl.BlockSpec((1, HW, Cpad), lambda n, t: (n, 0, 0)),
            scratch_shapes=[
                pltpu.VMEM((1, Cpad), jnp.float32),   # per-channel sum
                pltpu.VMEM((1, Cpad), jnp.float32),   # per-channel sum of squares
            ],
        ),
        compiler_params=pltpu.CompilerParams(
            dimension_semantics=("parallel", "arbitrary"),
            vmem_limit_bytes=vmem_limit,
        ),
        cost_estimate=cost,
    )(patches, w_mat)

    # Strip channel padding; transpose back to NCHW for PyTorch-compatible output.
    out = out[:, :, :outC]                                      # (N, HW, outC)
    return jnp.transpose(out, (0, 2, 1)).reshape(N, outC, Ho, Wo)


def _ref_forward(x, weight, bias, stride):
    """Pure-JAX f32 reference (includes the bias, which InstanceNorm cancels)."""
    xp = jnp.pad(x, ((0, 0), (0, 0), (1, 1), (1, 1)), mode="reflect")
    conv = jax.lax.conv_general_dilated(
        xp, weight, window_strides=(stride, stride), padding="VALID",
        dimension_numbers=("NCHW", "OIHW", "NCHW")) + bias[None, :, None, None]
    mean = jnp.mean(conv, axis=(2, 3), keepdims=True)
    var = jnp.mean((conv - mean) ** 2, axis=(2, 3), keepdims=True)
    ynorm = (conv - mean) * jax.lax.rsqrt(var + EPS)
    return jnp.where(ynorm >= 0, ynorm, NEG_SLOPE * ynorm)


if __name__ == "__main__":
    key = jax.random.PRNGKey(0)

    # Case 1: typical down-sampling block (stride 2, even spatial output).
    # Case 2: stride-1 block with odd spatial output (exercises the full-HW tile path).
    cases = [
        dict(N=2, inC=4, outC=8, H=16, W=16, stride=2),
        dict(N=1, inC=3, outC=8, H=16, W=16, stride=1),
    ]

    ok = True
    for i, c in enumerate(cases):
        k_x, k_w, k_b, key = jax.random.split(key, 4)
        x = jax.random.normal(k_x, (c["N"], c["inC"], c["H"], c["W"]),
                              dtype=jnp.float32)
        weight = jax.random.normal(
            k_w, (c["outC"], c["inC"], KSIZE, KSIZE), dtype=jnp.float32) * 0.1
        bias = jax.random.normal(k_b, (c["outC"],), dtype=jnp.float32) * 0.1

        y = block_forward(x, weight, bias, c["stride"])
        jax.block_until_ready(y)

        y_ref = _ref_forward(x, weight, bias, c["stride"])
        Ho = (c["H"] + 2 - KSIZE) // c["stride"] + 1
        Wo = (c["W"] + 2 - KSIZE) // c["stride"] + 1
        if y.shape != (c["N"], c["outC"], Ho, Wo):
            ok = False
            print(f"case {i}: shape mismatch {y.shape}")
        # bf16 MXU inputs vs f32 reference -> relaxed tolerance
        if not jnp.allclose(y, y_ref, atol=2e-2, rtol=2e-2):
            ok = False
            print(f"case {i}: max abs err {jnp.max(jnp.abs(y - y_ref))}")

    if ok:
        print("KERNEL_OK")
</pallas_src>

<mosaic_0001>
module attributes {stable_mosaic.version = 11 : i64} {
  func.func @_block_kernel(%arg0: i32, %arg1: i32, %arg2: memref<1x64x64xbf16, #tpu.memory_space<vmem>>, %arg3: memref<64x128xbf16, #tpu.memory_space<vmem>>, %arg4: memref<1x64x128xf32, #tpu.memory_space<vmem>>, %arg5: memref<1x128xf32, #tpu.memory_space<vmem>>, %arg6: memref<1x128xf32, #tpu.memory_space<vmem>>) attributes {dimension_semantics = [#tpu.dimension_semantics<parallel>, #tpu.dimension_semantics<arbitrary>], iteration_bounds = array<i64: 2, 1>, scalar_prefetch = 0 : i64, scratch_operands = 2 : i64, tpu.core_type = #tpu.core_type<tc>, window_params = [{transform_indices = @transform_0, window_bounds = array<i64: 1, 64, 64>}, {pipeline_mode = #tpu.pipeline_mode<synchronous>, transform_indices = @transform_1, window_bounds = array<i64: 64, 128>}, {transform_indices = @transform_2, window_bounds = array<i64: 1, 64, 128>}]} {
    %c0_i32 = arith.constant 0 : i32
    %0 = arith.cmpi eq, %arg1, %c0_i32 : i32
    %1 = arith.extui %0 : i1 to i32
    %c0_i32_0 = arith.constant 0 : i32
    %2 = arith.cmpi ne, %1, %c0_i32_0 : i32
    scf.if %2 {
      %cst_20 = arith.constant 0.000000e+00 : f32
      %24 = vector.broadcast %cst_20 : f32 to vector<1x128xf32>
      %c0_21 = arith.constant 0 : index
      %c0_22 = arith.constant 0 : index
      %25 = vector.load %arg5[%c0_21, %c0_22] : memref<1x128xf32, #tpu.memory_space<vmem>>, vector<1x128xf32>
      tpu.vector_store %arg5[%c0_21, %c0_22], %24 {strides = array<i32>} : memref<1x128xf32, #tpu.memory_space<vmem>>, vector<1x128xf32>,
      %cst_23 = arith.constant 0.000000e+00 : f32
      %26 = vector.broadcast %cst_23 : f32 to vector<1x128xf32>
      %c0_24 = arith.constant 0 : index
      %c0_25 = arith.constant 0 : index
      %27 = vector.load %arg6[%c0_24, %c0_25] : memref<1x128xf32, #tpu.memory_space<vmem>>, vector<1x128xf32>
      tpu.vector_store %arg6[%c0_24, %c0_25], %26 {strides = array<i32>} : memref<1x128xf32, #tpu.memory_space<vmem>>, vector<1x128xf32>,
    } else {
    }
    %c0 = arith.constant 0 : index
    %c0_1 = arith.constant 0 : index
    %c0_2 = arith.constant 0 : index
    %3 = vector.load %arg2[%c0, %c0_1, %c0_2] : memref<1x64x64xbf16, #tpu.memory_space<vmem>>, vector<1x64x64xbf16>
    %4 = vector.shape_cast %3 : vector<1x64x64xbf16> to vector<64x64xbf16>
    %c0_3 = arith.constant 0 : index
    %c0_4 = arith.constant 0 : index
    %5 = vector.load %arg3[%c0_3, %c0_4] : memref<64x128xbf16, #tpu.memory_space<vmem>>, vector<64x128xbf16>
    %cst = arith.constant dense<0.000000e+00> : vector<64x128xf32>
    %6 = tpu.matmul %4, %5, %cst {dimension_numbers = #tpu.dot_dimension_numbers<[1], [0], [0], [1], [0, 0, 1, 1], [], []>} : vector<64x64xbf16>, vector<64x128xbf16>, vector<64x128xf32> -> vector<64x128xf32>
    %c0_5 = arith.constant 0 : index
    %c0_6 = arith.constant 0 : index
    %7 = vector.load %arg5[%c0_5, %c0_6] : memref<1x128xf32, #tpu.memory_space<vmem>>, vector<1x128xf32>
    %cst_7 = arith.constant dense<0.000000e+00> : vector<128xf32>
    %8 = vector.multi_reduction <add>, %6, %cst_7 [0] : vector<64x128xf32> to vector<128xf32>
    %9 = vector.shape_cast %8 : vector<128xf32> to vector<1x128xf32>
    %10 = arith.addf %7, %9 : vector<1x128xf32>
    %c0_8 = arith.constant 0 : index
    %c0_9 = arith.constant 0 : index
    %11 = vector.load %arg5[%c0_8, %c0_9] : memref<1x128xf32, #tpu.memory_space<vmem>>, vector<1x128xf32>
    tpu.vector_store %arg5[%c0_8, %c0_9], %10 {strides = array<i32>} : memref<1x128xf32, #tpu.memory_space<vmem>>, vector<1x128xf32>,
    %c0_10 = arith.constant 0 : index
    %c0_11 = arith.constant 0 : index
    %12 = vector.load %arg6[%c0_10, %c0_11] : memref<1x128xf32, #tpu.memory_space<vmem>>, vector<1x128xf32>
    %13 = arith.mulf %6, %6 : vector<64x128xf32>
    %cst_12 = arith.constant dense<0.000000e+00> : vector<128xf32>
    %14 = vector.multi_reduction <add>, %13, %cst_12 [0] : vector<64x128xf32> to vector<128xf32>
    %15 = vector.shape_cast %14 : vector<128xf32> to vector<1x128xf32>
    %16 = arith.addf %12, %15 : vector<1x128xf32>
    %c0_13 = arith.constant 0 : index
    %c0_14 = arith.constant 0 : index
    %17 = vector.load %arg6[%c0_13, %c0_14] : memref<1x128xf32, #tpu.memory_space<vmem>>, vector<1x128xf32>
    tpu.vector_store %arg6[%c0_13, %c0_14], %16 {strides = array<i32>} : memref<1x128xf32, #tpu.memory_space<vmem>>, vector<1x128xf32>,
    %c0_15 = arith.constant 0 : index
    %c0_16 = arith.constant 0 : index
    %c0_17 = arith.constant 0 : index
    %18 = vector.load %arg4[%c0_15, %c0_16, %c0_17] : memref<1x64x128xf32, #tpu.memory_space<vmem>>, vector<1x64x128xf32>
    %19 = vector.shape_cast %18 : vector<1x64x128xf32> to vector<64x128xf32>
    %20 = vector.shape_cast %6 : vector<64x128xf32> to vector<1x64x128xf32>
    tpu.vector_store %arg4[%c0_15, %c0_16, %c0_17], %20 {strides = array<i32>} : memref<1x64x128xf32, #tpu.memory_space<vmem>>, vector<1x64x128xf32>,
    %c0_i32_18 = arith.constant 0 : i32
    %21 = arith.cmpi eq, %arg1, %c0_i32_18 : i32
    %22 = arith.extui %21 : i1 to i32
    %c0_i32_19 = arith.constant 0 : i32
    %23 = arith.cmpi ne, %22, %c0_i32_19 : i32
    scf.if %23 {
      %c0_20 = arith.constant 0 : index
      %c0_21 = arith.constant 0 : index
      %24 = vector.load %arg5[%c0_20, %c0_21] : memref<1x128xf32, #tpu.memory_space<vmem>>, vector<1x128xf32>
      %cst_22 = arith.constant 1.562500e-02 : f32
      %25 = vector.broadcast %cst_22 : f32 to vector<1x128xf32>
      %26 = arith.mulf %24, %25 : vector<1x128xf32>
      %c0_23 = arith.constant 0 : index
      %c0_24 = arith.constant 0 : index
      %27 = vector.load %arg6[%c0_23, %c0_24] : memref<1x128xf32, #tpu.memory_space<vmem>>, vector<1x128xf32>
      %cst_25 = arith.constant 1.562500e-02 : f32
      %28 = vector.broadcast %cst_25 : f32 to vector<1x128xf32>
      %29 = arith.mulf %27, %28 : vector<1x128xf32>
      %30 = arith.mulf %26, %26 : vector<1x128xf32>
      %31 = arith.subf %29, %30 : vector<1x128xf32>
      %cst_26 = arith.constant 0.000000e+00 : f32
      %32 = vector.broadcast %cst_26 : f32 to vector<1x128xf32>
      %33 = arith.maximumf %31, %32 : vector<1x128xf32>
      %cst_27 = arith.constant 9.99999974E-6 : f32
      %34 = vector.broadcast %cst_27 : f32 to vector<1x128xf32>
      %35 = arith.addf %33, %34 : vector<1x128xf32>
      %36 = math.rsqrt %35 : vector<1x128xf32>
      %cst_28 = arith.constant 0.000000e+00 : f32
      %37 = vector.broadcast %cst_28 : f32 to vector<1x128xf32>
      %38 = arith.subf %37, %26 : vector<1x128xf32>
      %39 = arith.mulf %38, %36 : vector<1x128xf32>
      %c0_29 = arith.constant 0 : index
      %c0_30 = arith.constant 0 : index
      %c0_31 = arith.constant 0 : index
      %40 = vector.load %arg4[%c0_29, %c0_30, %c0_31] : memref<1x64x128xf32, #tpu.memory_space<vmem>>, vector<1x64x128xf32>
      %41 = vector.shape_cast %40 : vector<1x64x128xf32> to vector<64x128xf32>
      %42 = vector.broadcast %36 : vector<1x128xf32> to vector<64x128xf32>
      %43 = arith.mulf %41, %42 : vector<64x128xf32>
      %44 = vector.broadcast %39 : vector<1x128xf32> to vector<64x128xf32>
      %45 = arith.addf %43, %44 : vector<64x128xf32>
      %cst_32 = arith.constant 0.000000e+00 : f32
      %46 = vector.broadcast %cst_32 : f32 to vector<64x128xf32>
      %47 = arith.cmpf oge, %45, %46 : vector<64x128xf32>
      %cst_33 = arith.constant 2.000000e-01 : f32
      %48 = vector.broadcast %cst_33 : f32 to vector<64x128xf32>
      %49 = arith.mulf %48, %45 : vector<64x128xf32>
      %50 = arith.select %47, %45, %49 : vector<64x128xi1>, vector<64x128xf32>
      %c0_34 = arith.constant 0 : index
      %c0_35 = arith.constant 0 : index
      %c0_36 = arith.constant 0 : index
      %51 = vector.load %arg4[%c0_34, %c0_35, %c0_36] : memref<1x64x128xf32, #tpu.memory_space<vmem>>, vector<1x64x128xf32>
      %52 = vector.shape_cast %51 : vector<1x64x128xf32> to vector<64x128xf32>
      %53 = vector.shape_cast %50 : vector<64x128xf32> to vector<1x64x128xf32>
      tpu.vector_store %arg4[%c0_34, %c0_35, %c0_36], %53 {strides = array<i32>} : memref<1x64x128xf32, #tpu.memory_space<vmem>>, vector<1x64x128xf32>,
    } else {
    }
    return
  }
  func.func @transform_0(%arg0: i32, %arg1: i32) -> (i32, i32, i32) {
    %c0_i32 = arith.constant 0 : i32
    %c0_i32_0 = arith.constant 0 : i32
    return %arg0, %arg1, %c0_i32 : i32, i32, i32
  }
  func.func @transform_1(%arg0: i32, %arg1: i32) -> (i32, i32) {
    %c0_i32 = arith.constant 0 : i32
    %c0_i32_0 = arith.constant 0 : i32
    %c0_i32_1 = arith.constant 0 : i32
    return %c0_i32, %c0_i32_0 : i32, i32
  }
  func.func @transform_2(%arg0: i32, %arg1: i32) -> (i32, i32, i32) {
    %c0_i32 = arith.constant 0 : i32
    %c0_i32_0 = arith.constant 0 : i32
    %c0_i32_1 = arith.constant 0 : i32
    return %arg0, %c0_i32, %c0_i32_0 : i32, i32, i32
  }
}

</mosaic_0001>

<bundles_post_ra>
// kernel: tpu_custom_call.1
= control target key start
LH: loop header
LB: loop body
LE: loop exit
PB: predicated region body
PF: predicated region fallthrough
CT: control target
= control target key end

     0   :  { %7 = vsyncpa [#allocation5], 0  ;;  %s1132_s0 = inlined_call_operand.hbm [shape: bf16[2,64,64], index: 0, kind: input, shape index: {}]   ;;  %s1133_s1 = inlined_call_operand.hbm [shape: bf16[64,128], index: 1, kind: input, shape index: {}]   ;;  %s1134_s2 = inlined_call_operand.hbm [shape: f32[2,64,128], index: 2, kind: output, shape index: {}]  }
   0x1   :  { %9 = vsyncpa [#allocation5 + $0x1], 0 }
   0x2   :  { %10 = vsyncpa [#allocation8], 0 }
   0x3   :  { %11 = vsyncpa [#allocation6], 0 }
   0x4   :  { %13 = vsyncpa [#allocation6 + $0x1], 0  ;;  %s891_s9 = smov 0   ;;  %s893_s10 = smov 0  }
   0x5   :  { %s895_s11 = smov 0   ;;  %s897_s12 = smov 0  }
   0x6   :  { %s899_s13 = smov 0   ;;  %s901_s14 = smov 0  }
   0x7 LB: > { %s577_s15 = sadd.s32 4294967295, %s866_s14   ;;  %s578_s16 = sadd.s32 4294967294, %s866_s14   ;;  %s866_s14 = sphi %s901_s14, %s19_s14   ;;  %s862_s13 = sphi %s899_s13, %s1154_s13   ;;  %s858_s12 = sphi %s897_s12, %s1153_s12   ;;  %s854_s11 = sphi %s895_s11, %s1152_s11   ;;  %s850_s10 = sphi %s893_s10, %s1151_s10   ;;  %s846_s9 = sphi %s891_s9, %s1150_s9  }
   0x8   : > { %p53_p0 = scmp.ne.s32.totalorder %s850_s10, %s846_s9  ;;  %p925_p1 = scmp.eq.s32.totalorder %s577_s15, 0 }
   0x9   : > { %p929_p2 = scmp.eq.s32.totalorder %s577_s15, 1  ;;  %p104_p3 = scmp.eq.s32.totalorder %s578_s16, 1 }
   0xa   : > { %p935_p4 = por %p925_p1, %p53_p0  ;;  %p579_p5 = scmp.ge.s32.totalorder %s866_s14, 1 }
   0xb   : > { %p940_p6 = por %p104_p3, %p53_p0  ;;  %p111_p7 = scmp.lt.s32.totalorder %s866_s14, 3 }
   0xc   : > { %s1139_s19 = scalar_select %p935_p4, 1, 0 }
   0xd   : > { %s1140_s20 = scalar_select %p940_p6, 1, 0 }
   0xe   : > { %p945_p8 = pnand %p579_p5, %p111_p7  ;;  %s868_s22 = smov [#allocation7]  }
   0xf   : > { %s123_s23 = sshll.u32 %s868_s22, 4  ;;  %s31_s25 = sadd.s32 1, %s862_s13  ;;  %s124_s23 = int_to_ptr.vmem [resolvable:$true] %s123_s23 }
  0x10   : > { %p648_p9 = pneg %p945_p8  ;;  %s739_s26 = scalar_lea.vmem %s124_s23, 512 }
  0x11   : > { %p740_p13 = scmp.ne.s32.totalorder %s124_s23, %s739_s26  ;;  %p747_p5 = scmp.lt.s32.totalorder %s124_s23, %s124_s23 }
  0x12   : > { %p954_p11 = pnand %p648_p9, %p925_p1  ;;  %p748_p7 = scmp.lt.s32.totalorder %s739_s26, %s739_s26 }
  0x14   : > { %p730_p12 = pneg %p954_p11  ;;  %p749_p6 = por %p748_p7, %p747_p5 }
  0x16   : > { %p742_p0 = pnand %p740_p13, %p730_p12 }
  0x18   : > { %p743_p3 = pneg %p742_p0 }
  0x1a   : > { %p750_p4 = pnand %p749_p6, %p743_p3 }
  0x1c   : > { %753 = shalt.err (!%p750_p4)
}
  0x1d   : > { %s1136_s27 = smov 64   ;;  %s870_s28 = smov 4  }
  0x1e   : > { %651 = dma.hbm_to_vmem [thread:$0]  (!%p954_p11), %s1133_s1, 512, %s124_s23, [#allocation8], %s1136_s27, %s1136_s27, %s870_s28  }
  0x1f   : > { %p33_p4 = scmp.ge.s32.totalorder %s31_s25, 2  ;;  %s40_s3 = sadd.s32 1, %s854_s11 }
  0x20   : > { %p47_p6 = scmp.ne.s32.totalorder %s854_s11, %s850_s10  ;;  %p48_p9 = scmp.eq.s32.totalorder %s866_s14, 0 }
  0x21   : > { %s1156_s25 = smov (%p33_p4, %s31_s25), 0  ;;  %p661_p0 = scmp.lt.s32.totalorder %s866_s14, 2 }
  0x22   : > { %p975_p12 = por %p48_p9, %p47_p6  ;;  %p981_p13 = por %p929_p2, %p47_p6 }
  0x23   : > { %s35_s6 = ssub.s32 %s862_s13, %s1156_s25  ;;  %s137_s7 = sand.u32 1, %s854_s11  }
  0x24   : > { %p38_p11 = scmp.eq.s32.totalorder %s35_s6, 0  ;;  %s582_s8 = sshll.u32 %s137_s7, 5 }
  0x25   : > { %s606_s16 = sshll.u32 %s862_s13, 9  ;;  %s141_s26 = scalar_lea.vmem [#allocation4], %s582_s8 }
  0x26   : > { %s990_s15 = scalar_select %p38_p11, %s854_s11, %s40_s3  }
  0x27   : > { %s149_s24 = scalar_lea.hbm %s1132_s0, %s606_s16  ;;  %s150_s29 = sshll.u32 %s141_s26, 4  ;;  %s151_s29 = int_to_ptr.vmem [resolvable:$true] %s150_s29 }
  0x28   : > { %p998_p2 = pnand %p661_p0, %p975_p12  ;;  %s138_s30 = scalar_lea.sflag [#allocation5], %s137_s7 }
  0x29   : > { %s767_s6 = scalar_lea.vmem %s151_s29, 512  ;;  %s871_s3 = smov [#allocation4]  }
  0x2a   : > { %p756_p3 = pneg %p998_p2  ;;  %p768_p5 = scmp.ne.s32.totalorder %s151_s29, %s767_s6 }
  0x2b   : > { %s772_s27 = sshll.u32 %s871_s3, 4  ;;  %s773_s27 = int_to_ptr.vmem [resolvable:$false] %s772_s27 }
  0x2c   : > { %p770_p7 = pnand %p768_p5, %p756_p3  ;;  %s774_s16 = scalar_lea.vmem %s773_s27, 1024 }
  0x2d   : > { %p775_p6 = scmp.lt.s32.totalorder %s151_s29, %s773_s27  ;;  %p776_p9 = scmp.lt.s32.totalorder %s774_s16, %s767_s6 }
  0x2e   : > { %p771_p4 = pneg %p770_p7 }
  0x2f   : > { %p777_p11 = por %p776_p9, %p775_p6 }
  0x31   : > { %p778_p10 = pnand %p777_p11, %p771_p4 }
  0x33   : > { %781 = shalt.err (!%p778_p10)
}
  0x34   : > { %s1146_s4 = smov 64   ;;  %162 = sbr.rel (%p945_p8) target bundleno = 364 (0x16c), region = 28 }
  0x35   : > { %655 = dma.hbm_to_vmem [thread:$0]  (!%p998_p2), %s149_s24, 512, %s151_s29, %s138_s30, %s1146_s4, %s1146_s4, %s870_s28  }
  0x36   : > { %s1012_s7 = sand.u32 (!%p945_p8), 1, %s850_s10   ;;  %p1147_p12 = scmp.ne.s32.totalorder (!%p945_p8), %s1139_s19, 0 }
  0x37   : > { %s586_s27 = sshll.u32 (!%p945_p8), %s1012_s7, 5  ;;  %s165_s8 = scalar_lea.sflag (!%p945_p8), [#allocation5], %s1012_s7 }
  0x38   : > { %s168_s22 = scalar_lea.vmem (!%p945_p8), [#allocation4], %s586_s27 }
  0x39   : > { %833 = dma.done.wait (%p1147_p12), %s165_s8, 512  }
  0x3a   : > { %835 = vsyncadd (%p1147_p12), %s165_s8, 4294966784 }
  0x3b   : > { %837 = dma.done.wait (%p925_p1), [#allocation8], 512  }
  0x3c   : > { %839 = vsyncadd (%p925_p1), [#allocation8], 4294966784  ;;  %v718_v0 = vld [vmem:[#allocation7 + $0x18] sm:$0xff]   ;;  %v719_v1 = vld [vmem:[#allocation7 + $0x10] sm:$0xff]   ;;  %vm261_vm0 = vcmask 523264   ;;  %v872_v8 = vmov 0.0   ;;  %v410_v63 = vlaneseq }
  0x3d   : > { %616 = vmatprep.subr.bf16.mxu0 %v718_v0  ;;  %632 = vmatprep.subr.bf16.mxu1 %v718_v0  ;;  %v720_v2 = vld [vmem:[#allocation7 + $0x8] sm:$0xff]   ;;  %v722_v3 = vld [vmem:[%s168_s22] sm:$0xff]   ;;  %v724_v4 = vld [vmem:[%s168_s22 + $0x10] sm:$0xff]   ;;  %199 = vst [vmem:[#allocation2] sm:$0x1] %v872_v8  ;;  %s588_s17 = sshll.u32 %s1012_s7, 6 }
  0x3e   : > { %617 = vmatpush3.bf16.msra.mxu0 %v718_v0  ;;  %636 = vmatpush3.bf16.msra.mxu1 %v718_v0  ;;  %v721_v5 = vld [vmem:[#allocation7] sm:$0xff]   ;;  %v723_v6 = vld [vmem:[%s168_s22 + $0x8] sm:$0xff]   ;;  %v725_v7 = vld [vmem:[%s168_s22 + $0x18] sm:$0xff]   ;;  %200 = vst [vmem:[#allocation3] sm:$0x1] %v872_v8  ;;  %v411_v0 = vshrl.u32 %v410_v63, 7 }
  0x3f   : > { %618 = vmatprep.subr.bf16.mxu0 %v719_v1  ;;  %633 = vmatprep.subr.bf16.mxu1 %v719_v1  ;;  %s607_s19 = sshll.u32 %s858_s12, 10  ;;  %s192_s21 = scalar_lea.vmem [#allocation9], %s588_s17 }
  0x40   : > { %624 = vmatprep.mubr.msk.bf16.mxu0 %vm261_vm0, %v722_v3  ;;  %628 = vmatprep.mubr.msk.bf16.mxu1 %vm261_vm0, %v724_v4  ;;  %s483_s28 = sshll.u32 %s192_s21, 4  ;;  %s1076_s12 = scalar_lea.hbm %s1134_s2, %s607_s19  ;;  %s1078_s28 = int_to_ptr.vmem [resolvable:$true] %s483_s28 }
  0x41   : > { %s470_s26 = scalar_lea.sflag [#allocation6], %s1012_s7  ;;  %s782_s29 = scalar_lea.vmem %s1078_s28, 1024 }
  0x42   : > { %619 = vmatpush3.bf16.msra.mxu0 %v719_v1  ;;  %637 = vmatpush3.bf16.msra.mxu1 %v719_v1  ;;  %v412_v1 = vsub.s32 0, %v411_v0  ;;  %p783_p1 = scmp.ne.s32.totalorder %s1078_s28, %s782_s29  ;;  %s873_s18 = smov [#allocation9]  }
  0x43   : > { %620 = vmatprep.subr.bf16.mxu0 %v720_v2  ;;  %634 = vmatprep.subr.bf16.mxu1 %v720_v2  ;;  %s786_s30 = sshll.u32 %s873_s18, 4  ;;  %s787_s30 = int_to_ptr.vmem [resolvable:$false] %s786_s30 }
  0x44   : > { %v339_v48 = vld [vmem:[#allocation2] sm:$0x1]  ;;  %p784_p8 = pnand %p783_p1, %p981_p13  ;;  %s788_s6 = scalar_lea.vmem %s787_s30, 2048 }
  0x45   : > { %v355_v51 = vld [vmem:[#allocation3] sm:$0x1]  ;;  %p789_p0 = scmp.lt.s32.totalorder %s1078_s28, %s787_s30  ;;  %p790_p2 = scmp.lt.s32.totalorder %s788_s6, %s782_s29 }
  0x46   : > { %621 = vmatpush3.bf16.msra.mxu0 %v720_v2  ;;  %638 = vmatpush3.bf16.msra.mxu1 %v720_v2  ;;  %p785_p10 = pneg %p784_p8 }
  0x47   : > { %622 = vmatprep.subr.bf16.mxu0 %v721_v5  ;;  %635 = vmatprep.subr.bf16.mxu1 %v721_v5  ;;  %p791_p3 = por %p790_p2, %p789_p0 }
  0x49   : > { %p792_p5 = pnand %p791_p3, %p785_p10 }
  0x4a   : > { %623 = vmatpush3.bf16.msra.mxu0 %v721_v5  ;;  %639 = vmatpush3.bf16.msra.mxu1 %v721_v5 }
  0x4d   : > { %625 = vmatmul.mubr.msk.bf16.vlgmr.msra.gmra.mxu0 %vm261_vm0, %v723_v6  ;;  %629 = vmatmul.mubr.msk.bf16.vlgmr.msra.gmra.mxu1 %vm261_vm0, %v725_v7 }
 0x10d   : > { %v1028_v9 = vpop.f32.mrf.mxu0  ;;  %v1030_v10 = vpop.f32.mrf.mxu1 }
 0x10e   : > { %v358_v19 = vmul.f32 %v1028_v9, %v1028_v9  ;;  %v362_v32 = vmul.f32 %v1030_v10, %v1030_v10 }
 0x10f   : > { %v1032_v11 = vpop.f32.mrf.mxu0  ;;  %v1036_v13 = vpop.f32.mrf.mxu1 }
 0x110   : > { %v356_v15 = vmul.f32 %v1032_v11, %v1032_v11  ;;  %v360_v26 = vmul.f32 %v1036_v13, %v1036_v13 }
 0x111   : > { %v1034_v12 = vpop.f32.mrf.mxu0  ;;  %v1046_v18 = vpop.f32.mrf.mxu1 }
 0x112   : > { %v359_v22 = vmul.f32 %v1034_v12, %v1034_v12  ;;  %v363_v35 = vmul.f32 %v1046_v18, %v1046_v18 }
 0x113   : > { %v1038_v14 = vpop.f32.mrf.mxu0  ;;  %v327_v25 = vpop.f32.mrf.mxu1 }
 0x114   : > { %v340_v16 = vadd.f32 %v1038_v14, %v1032_v11  ;;  %v357_v17 = vmul.f32 %v1038_v14, %v1038_v14  ;;  %v361_v30 = vmul.f32 %v327_v25, %v327_v25 }
 0x116   : > { %v341_v20 = vadd.f32 %v1028_v9, %v340_v16  ;;  %v364_v21 = vadd.f32 %v357_v17, %v356_v15 }
 0x118   : > { %v365_v23 = vadd.f32 %v364_v21, %v358_v19  ;;  %v342_v24 = vadd.f32 %v1034_v12, %v341_v20 }
 0x11a   : > { %v343_v27 = vadd.f32 %v342_v24, %v1036_v13  ;;  %v366_v28 = vadd.f32 %v365_v23, %v359_v22 }
 0x11c   : > { %v344_v29 = vadd.f32 %v343_v27, %v327_v25  ;;  %v367_v31 = vadd.f32 %v366_v28, %v360_v26 }
 0x11e   : > { %v345_v33 = vadd.f32 %v1030_v10, %v344_v29  ;;  %v368_v34 = vadd.f32 %v367_v31, %v361_v30 }
 0x120   : > { %v346_v36 = vadd.f32 %v1046_v18, %v345_v33  ;;  %v369_v37 = vadd.f32 %v368_v34, %v362_v32 }
 0x122   : > { %v347_v38 = vrot.slane %v346_v36, 4  ;;  %v370_v39 = vadd.f32 %v369_v37, %v363_v35 }
 0x124   : > { %v348_v40 = vadd.f32 %v347_v38, %v346_v36  ;;  %v371_v41 = vrot.slane %v370_v39, 4 }
 0x126   : > { %v349_v42 = vrot.slane %v348_v40, 2  ;;  %v372_v43 = vadd.f32 %v371_v41, %v370_v39 }
 0x128   : > { %v350_v44 = vadd.f32 %v349_v42, %v348_v40  ;;  %v373_v45 = vrot.slane %v372_v43, 2 }
 0x12a   : > { %v351_v46 = vrot.slane %v350_v44, 1  ;;  %v374_v47 = vadd.f32 %v373_v45, %v372_v43 }
 0x12c   : > { %v352_v49 = vadd.f32 %v351_v46, %v350_v44  ;;  %v375_v50 = vrot.slane %v374_v47, 1 }
 0x12e   : > { %v353_v52 = vadd.f32 %v352_v49, %v339_v48  ;;  %v376_v53 = vadd.f32 %v375_v50, %v374_v47 }
 0x130   : > { %354 = vst [vmem:[#allocation2] sm:$0x1] %v353_v52  ;;  %v377_v54 = vadd.f32 %v376_v53, %v355_v51 }
 0x132   : > { %378 = vst [vmem:[#allocation3] sm:$0x1] %v377_v54 }
 0x137   : > { %v390_v55 = vld [vmem:[#allocation2] sm:$0x1] }
 0x138   : > { %v391_v56 = vmul.f32 0.015625, %v390_v55 }
 0x139   : > { %v392_v57 = vld [vmem:[#allocation3] sm:$0x1] }
 0x13a   : > { %v393_v58 = vmul.f32 0.015625, %v392_v57  ;;  %v394_v59 = vmul.f32 %v391_v56, %v391_v56  ;;  %v399_v2 = vsub.f32 0.0, %v391_v56 }
 0x13c   : > { %v395_v60 = vsub.f32 %v393_v58, %v394_v59 }
 0x13e   : > { %v396_v61 = vmax.f32 %v395_v60, 0.0 }
 0x140   : > { %v397_v62 = vadd.f32 1e-05, %v396_v61 }
 0x142   : > { %726 = vrsqrt.f32 %v397_v62 }
 0x14f   : > { %v727_v3 = vpop.eup %726 }
 0x150   : > { %v400_v4 = vmul.f32 %v727_v3, %v399_v2  ;;  %v413_v5 = vrot.slane %v727_v3, %v412_v1 }
 0x152   : > { %v420_v6 = vmul.f32 %v413_v5, %v327_v25  ;;  %v427_v7 = vrot.slane %v400_v4, %v412_v1  ;;  %v415_v8 = vmul.f32 %v413_v5, %v1032_v11  ;;  %v416_v15 = vmul.f32 %v413_v5, %v1038_v14 }
 0x153   : > { %v417_v16 = vmul.f32 %v1028_v9, %v413_v5  ;;  %v418_v17 = vmul.f32 %v1034_v12, %v413_v5  ;;  %v419_v19 = vmul.f32 %v413_v5, %v1036_v13  ;;  %v421_v20 = vmul.f32 %v1030_v10, %v413_v5 }
 0x154   : > { %v434_v21 = vadd.f32 %v427_v7, %v420_v6  ;;  %v422_v22 = vmul.f32 %v1046_v18, %v413_v5  ;;  %v429_v23 = vadd.f32 %v427_v7, %v415_v8  ;;  %v430_v24 = vadd.f32 %v427_v7, %v416_v15 }
 0x155   : > { %v431_v25 = vadd.f32 %v427_v7, %v417_v16  ;;  %v432_v26 = vadd.f32 %v427_v7, %v418_v17  ;;  %v433_v27 = vadd.f32 %v427_v7, %v419_v19  ;;  %v435_v11 = vadd.f32 %v427_v7, %v421_v20 }
 0x156   : > { %vm442_vm1 = vcmp.ge.f32.partialorder %v434_v21, 0.0  ;;  %v450_v14 = vmul.f32 0.2, %v434_v21  ;;  %v436_v28 = vadd.f32 %v427_v7, %v422_v22  ;;  %vm437_vm2 = vcmp.ge.f32.partialorder %v429_v23, 0.0 }
 0x157   : > { %vm438_vm3 = vcmp.ge.f32.partialorder %v430_v24, 0.0  ;;  %vm439_vm4 = vcmp.ge.f32.partialorder %v431_v25, 0.0  ;;  %vm440_vm5 = vcmp.ge.f32.partialorder %v432_v26, 0.0  ;;  %vm441_vm6 = vcmp.ge.f32.partialorder %v433_v27, 0.0 }
 0x158   : > { %v458_v9 = vsel %vm442_vm1, %v434_v21, %v450_v14  ;;  %vm443_vm7 = vcmp.ge.f32.partialorder %v435_v11, 0.0  ;;  %vm444_vm8 = vcmp.ge.f32.partialorder %v436_v28, 0.0  ;;  %v445_v10 = vmul.f32 0.2, %v429_v23 }
 0x159   : > { %466 = vst [vmem:[%s192_s21 + $0x28] sm:$0xff] %v458_v9  ;;  %v446_v12 = vmul.f32 0.2, %v430_v24  ;;  %v447_v13 = vmul.f32 0.2, %v431_v25 }
 0x15a   : > { %v448_v18 = vmul.f32 0.2, %v432_v26  ;;  %v449_v29 = vmul.f32 0.2, %v433_v27  ;;  %v451_v30 = vmul.f32 0.2, %v435_v11  ;;  %v453_v32 = vsel %vm437_vm2, %v429_v23, %v445_v10 }
 0x15b   : > { %v452_v31 = vmul.f32 0.2, %v436_v28  ;;  %v454_v33 = vsel %vm438_vm3, %v430_v24, %v446_v12  ;;  %v455_v34 = vsel %vm439_vm4, %v431_v25, %v447_v13  ;;  %461 = vst [vmem:[%s192_s21] sm:$0xff] %v453_v32 }
 0x15c   : > { %v456_v35 = vsel %vm440_vm5, %v432_v26, %v448_v18  ;;  %v457_v36 = vsel %vm441_vm6, %v433_v27, %v449_v29  ;;  %v459_v37 = vsel %vm443_vm7, %v435_v11, %v451_v30  ;;  %462 = vst [vmem:[%s192_s21 + $0x8] sm:$0xff] %v454_v33  ;;  %463 = vst [vmem:[%s192_s21 + $0x10] sm:$0xff] %v455_v34 }
 0x15d   : > { %v460_v38 = vsel %vm444_vm8, %v436_v28, %v452_v31  ;;  %464 = vst [vmem:[%s192_s21 + $0x18] sm:$0xff] %v456_v35  ;;  %465 = vst [vmem:[%s192_s21 + $0x20] sm:$0xff] %v457_v36 }
 0x15e   : > { %467 = vst [vmem:[%s192_s21 + $0x30] sm:$0xff] %v459_v37  ;;  %468 = vst [vmem:[%s192_s21 + $0x38] sm:$0xff] %v460_v38 }
 0x15f   : > { %795 = shalt.err (!%p792_p5)
}
 0x160   : > { %s796_s3 = scalar_lea.hbm %s1076_s12, 1024  ;;  %s800_s27 = scalar_lea.hbm %s1134_s2, 2048 }
 0x161   : > { %p797_p7 = scmp.ne.s32.totalorder %s1076_s12, %s796_s3  ;;  %p801_p9 = scmp.lt.s32.totalorder %s1076_s12, %s1134_s2 }
 0x162   : > { %p802_p11 = scmp.lt.s32.totalorder %s800_s27, %s796_s3 }
 0x163   : > { %p798_p4 = pnand %p797_p7, %p981_p13 }
 0x164   : > { %p803_p12 = por %p802_p11, %p801_p9 }
 0x165   : > { %p799_p6 = pneg %p798_p4 }
 0x167   : > { %p804_p1 = pnand %p803_p12, %p799_p6 }
 0x169   : > { %807 = shalt.err (!%p804_p1)
}
 0x16a   : > { %s874_s17 = smov 128   ;;  %s875_s19 = smov 8  }
 0x16b   : > { %646 = dma.vmem_to_hbm [thread:$0]  (%p981_p13), %s1078_s28, 1024, %s1076_s12, %s470_s26, %s874_s17, %s874_s17, %s875_s19  }
 0x16c PF: > { %s498_s21 = sand.u32 1, %s846_s9   ;;  %p1148_p8 = scmp.ne.s32.totalorder %s1140_s20, 0 }
 0x16d   : > { %p1149_p10 = scmp.ge.s32.totalorder %s866_s14, 2  ;;  %s499_s23 = scalar_lea.sflag [#allocation6], %s498_s21 }
 0x16f   : > { %p657_p0 = pnand %p1149_p10, %p1148_p8 }
 0x171   : > { %p658_p2 = pneg %p657_p0 }
 0x173   : > { %841 = dma.done.wait (%p658_p2), %s499_s23, 1024  }
 0x174   : > { %843 = vsyncadd (%p658_p2), %s499_s23, 4294966272  ;;  %s19_s14 = sadd.s32 1, %s866_s14   ;;  %s1150_s9 = smov %s850_s10 }
 0x175   : > { %p16_p3 = scmp.ge.s32.totalorder %s19_s14, 4   ;;  %s1151_s10 = smov %s854_s11 }
 0x176   : > { %s1152_s11 = smov %s990_s15  ;;  %s1153_s12 = smov %s862_s13 }
 0x177   : > { %s1154_s13 = smov %s1156_s25  ;;  %18 = sbr.rel (!%p16_p3) target bundleno = 7 (0x7), region = 85 }
 0x17c   :  { %504 = vsyncpa [#allocation5], 1 }
 0x17d   :  { %506 = vsyncpa [#allocation5 + $0x1], 1 }
 0x17e   :  { %507 = vsyncpa [#allocation8], 1 }
 0x17f   :  { %508 = vsyncpa [#allocation6], 1 }
 0x180   :  { %510 = vsyncpa [#allocation6 + $0x1], 1 }

</bundles_post_ra>
